<compile_context>
chip_gen: v6e
topology: v6e:2x2x1
jax: 0.10.0
libtpu: 0.0.40
codegen_flags: <defaults>
</compile_context>

<pallas_src>
import numpy as np
import jax
import jax.numpy as jnp
from jax import lax
from jax.experimental import pallas as pl
from jax.experimental.pallas import tpu as pltpu


def _round_up(x, m):
    return ((x + m - 1) // m) * m


def _build_pos_table(ids_np, n_pad):
    """Per-anchor list of positive candidate indices, -1 padded, (P_pad, n_pad)."""
    n = int(ids_np.shape[0])
    eq = ids_np[None, :] == ids_np[:, None]          # eq[i, j]: j is a positive of i
    p_max = int(eq.sum(axis=1).max()) if n else 1
    p_pad = max(8, _round_up(p_max, 8))
    tbl = np.full((p_pad, n_pad), -1, np.int32)
    for i in range(n):
        idxs = np.nonzero(eq[i])[0]
        tbl[: idxs.shape[0], i] = idxs
    return tbl, p_pad


def _make_kernel(*, n_pad, tm, p_pad, n_real, margin, cut_off, dval, nz_cut,
                 unroll):
    # All constants are Python scalars -> jaxpr literals, never captured
    # jax.Array constants.
    margin = float(margin)
    cut_off = float(cut_off)
    dval = float(dval)
    nz_cut = float(nz_cut)
    inv23 = 1.0 / float(1 << 23)

    def kernel(seed_ref, anc_ref, cand_ref, id_anc_ref, id_all_ref, pos_ref,
               out_ref, w_scr, sim_scr):
        d_idx = pl.program_id(0)          # 0: image anchors, 1: caption anchors
        t_idx = pl.program_id(1)          # anchor row tile

        anc = anc_ref[0]                  # (TM, D)
        cand = cand_ref[0]                # (N_pad, D)

        # sim_T[j, i] = <candidate_j, anchor_i>  ( == sim_mat[i, j] of the ref )
        dn = (((1,), (1,)), ((), ()))
        sim_t = lax.dot_general(cand, anc, dn,
                                preferred_element_type=jnp.float32)

        # Negative mask rebuilt in-kernel: different img id AND a real
        # (non-padded) candidate row.  Padded anchors are harmless: their loss
        # is gated by the -1 sentinel in the positive table.
        id_anc = id_anc_ref[...]          # (1, TM)    int32
        id_all = id_all_ref[...]          # (N_pad, 1) int32
        jj = lax.broadcasted_iota(jnp.int32, (n_pad, tm), 0)   # candidate idx
        negm = jnp.where((id_all != id_anc) & (jj < n_real), 1.0, 0.0)

        # Distance-weighted sampling weights (loss_forward of the reference).
        dist = jnp.maximum(jnp.sqrt(2.0 - 2.0 * sim_t), cut_off)
        lw = (2.0 - dval) * jnp.log(dist) \
            - (dval - 3.0) * 0.5 * jnp.log(1.0 - 0.25 * (dist * dist))
        bad = jnp.isinf(lw) | jnp.isnan(lw)
        lw = jnp.where(bad, 0.0, lw * negm)
        w = jnp.exp(lw - jnp.max(lw, axis=0, keepdims=True))
        w = w * negm * (dist < nz_cut).astype(jnp.float32)
        # Categorical sampling is scale invariant: the reference's explicit
        # normalization (w / (sum + 1e-20)) is folded into the thresholds.
        wsum = jnp.sum(w, axis=0, keepdims=True)               # (1, TM)
        ok = (wsum > 0.0).astype(jnp.float32)

        w_scr[...] = w
        sim_scr[...] = sim_t

        # One i.i.d. U[0,1) per (positive slot p, anchor i): murmur-style int32
        # mixer (portable, no TPU-only PRNG primitive), only (P_pad, TM) big.
        pp = lax.broadcasted_iota(jnp.int32, (p_pad, tm), 0)   # positive slot
        ii = lax.broadcasted_iota(jnp.int32, (p_pad, tm), 1)   # anchor in tile
        # (counter uniqueness only needs 2 * N_pad * P_pad < 2^31; wraparound
        # beyond that merely perturbs the hash.)
        cnt = (d_idx * n_pad + t_idx * tm + ii) * p_pad + pp
        x = cnt * (-1640531527) + seed_ref[0]                  # golden ratio
        x = x ^ (jnp.right_shift(x, 16) & 0xFFFF)              # logical >> 16
        x = x * (-2048144789)                                  # 0x85EBCA6B
        x = x ^ (jnp.right_shift(x, 13) & 0x7FFFF)             # logical >> 13
        x = x * (-1028477387)                                  # 0xC2B2AE35
        x = x ^ (jnp.right_shift(x, 16) & 0xFFFF)
        u = (x & 0x7FFFFF).astype(jnp.float32) * inv23         # [0, 1)
        thr = u * wsum                                         # (P_pad, TM)

        # Inverse-CDF sampling of one negative per (anchor, positive slot).
        # Select-carry exploits monotonicity of the CDF; the whole loop state
        # (csum (1,TM) + s_an (P_pad,TM)) is vreg resident; per iteration:
        # two (1,TM) row loads + cmp + select.  Rows m >= n_real are never
        # touched, so padded candidates can never be drawn.
        def body(m, carry):
            csum, s_an = carry
            w_m = w_scr[pl.ds(m, 1), :]                        # (1, TM)
            sim_next = sim_scr[pl.ds(m + 1, 1), :]             # (1, TM)
            csum = csum + w_m
            s_an = jnp.where(csum <= thr, sim_next, s_an)
            return csum, s_an

        s_an0 = jnp.zeros((p_pad, tm), jnp.float32) + sim_scr[0:1, :]
        init = (jnp.zeros((1, tm), jnp.float32), s_an0)
        _, s_an = lax.fori_loop(0, n_real - 1, body, init, unroll=unroll)

        # Epilogue: for each positive slot, extract s_ap = sim[anchor, pos_p]
        # via a masked axis-0 reduction (no per-lane gather needed) and
        # accumulate the hinge loss.  Empty slots (sentinel -1) contribute 0.
        sim_all = sim_scr[...]
        loss_acc = jnp.zeros((1, tm), jnp.float32)
        for p in range(p_pad):
            pos_row = pos_ref[p:p + 1, :]                      # (1, TM) int32
            match = jj == pos_row                              # (N_pad, TM)
            s_ap = jnp.sum(jnp.where(match, sim_all, 0.0),
                           axis=0, keepdims=True)              # (1, TM)
            valid = (pos_row >= 0).astype(jnp.float32)
            loss_acc = loss_acc + valid * ok * jnp.maximum(
                margin + s_an[p:p + 1, :] - s_ap, 0.0)

        out_ref[...] = jnp.reshape(loss_acc, (1, 1, 1, tm))

    return kernel


def triplet_loss(im, s, img_ids, seed=0, margin=0.2, cut_off=0.5, d=512.0,
                 nonzero_loss_cutoff=1.7, block_anchors=256, unroll=8,
                 mxu_dtype=jnp.bfloat16):
    """Pallas TPU forward pass of TripletLoss (square / same-batch branch).

    img_ids must be concrete (the positive table and P_max are data dependent).
    """
    n, dim = im.shape
    assert s.shape == (n, dim), "only the square (same-batch) branch is implemented"

    tm = block_anchors if n >= block_anchors else _round_up(n, 8)
    n_pad = _round_up(n, tm)
    nt = n_pad // tm

    ids_np = np.asarray(jax.device_get(img_ids)).astype(np.int64)
    assert ids_np.shape == (n,)
    assert np.all(np.abs(ids_np) < 2 ** 31), "img_ids must fit int32"
    pos_tbl_np, p_pad = _build_pos_table(ids_np, n_pad)
    pos_tbl = jnp.asarray(pos_tbl_np)                           # (P_pad, N_pad) i32

    # Low-precision (default bf16) inputs for the MXU matmul, f32 accumulation.
    # Both directions read the same stacked tensor; the grid swaps the anchor
    # and candidate roles.
    emb = jnp.stack([im, s], axis=0).astype(mxu_dtype)          # (2, N, D)
    if n_pad != n:
        emb = jnp.pad(emb, ((0, 0), (0, n_pad - n), (0, 0)))

    ids_i32 = jnp.asarray(ids_np.astype(np.int32))
    if n_pad != n:
        ids_i32 = jnp.pad(ids_i32, (0, n_pad - n))
    id_row = ids_i32.reshape(1, n_pad)      # anchor ids  (lane-dense row)
    id_col = ids_i32.reshape(n_pad, 1)      # candidate ids (sublane column)

    seed_arr = jnp.array([seed], dtype=jnp.int32)

    kernel = _make_kernel(
        n_pad=n_pad, tm=tm, p_pad=p_pad, n_real=n, margin=margin,
        cut_off=cut_off, dval=d, nz_cut=nonzero_loss_cutoff,
        unroll=min(unroll, max(1, n - 1)))

    # Explicit VMEM budget (double-buffered inputs + f32 scratches + slack),
    # clamped to stay under every generation's physical VMEM.
    bpe = 2 if mxu_dtype == jnp.bfloat16 else 4
    est = (2 * tm * dim * bpe                 # anchor block (double buffered)
           + 2 * n_pad * dim * bpe            # candidate block (double buffered)
           + 2 * n_pad * tm * 4               # w / sim_T scratch
           + 2 * p_pad * max(tm, 128) * 4     # positive table block
           + 2 * n_pad * 128 * 4              # id column (lane padded)
           + 16 * max(tm, 128) * 4)           # id row / output / misc
    vmem_limit = int(min(64 * 2 ** 20, max(2 * est, 32 * 2 ** 20)))

    out = pl.pallas_call(
        kernel,
        out_shape=jax.ShapeDtypeStruct((2, nt, 1, tm), jnp.float32),
        grid_spec=pltpu.PrefetchScalarGridSpec(
            num_scalar_prefetch=1,
            grid=(2, nt),
            in_specs=[
                # anchor row tile of the current direction
                pl.BlockSpec((1, tm, dim), lambda dd, t, s_: (dd, t, 0)),
                # full candidate matrix of the *other* direction (block index
                # only changes with the direction -> no refetch across tiles)
                pl.BlockSpec((1, n_pad, dim), lambda dd, t, s_: (1 - dd, 0, 0)),
                # anchor ids of the tile / candidate ids of all rows
                pl.BlockSpec((1, tm), lambda dd, t, s_: (0, t)),
                pl.BlockSpec((n_pad, 1), lambda dd, t, s_: (0, 0)),
                # positive-index table slice for the tile's anchors
                pl.BlockSpec((p_pad, tm), lambda dd, t, s_: (0, t)),
            ],
            out_specs=pl.BlockSpec((1, 1, 1, tm),
                                   lambda dd, t, s_: (dd, t, 0, 0)),
            scratch_shapes=[pltpu.VMEM((n_pad, tm), jnp.float32),   # weights
                            pltpu.VMEM((n_pad, tm), jnp.float32)],  # sim_T
        ),
        compiler_params=pltpu.CompilerParams(
            # direction axis -> megacore parallel (each core keeps exactly one
            # candidate matrix resident); anchor-tile axis arbitrary.
            dimension_semantics=("parallel", "arbitrary"),
            vmem_limit_bytes=vmem_limit,
        ),
    )(seed_arr, emb, emb, id_row, id_col, pos_tbl)

    return jnp.sum(out)


if __name__ == "__main__":
    key = jax.random.PRNGKey(0)
    k_im, k_s = jax.random.split(key)

    N, D = 8, 32
    im = jax.random.normal(k_im, (N, D), dtype=jnp.float32)
    s = jax.random.normal(k_s, (N, D), dtype=jnp.float32)
    # Embeddings are L2-normalized upstream in VSD_HREM; do the same here.
    im = im / jnp.linalg.norm(im, axis=1, keepdims=True)
    s = s / jnp.linalg.norm(s, axis=1, keepdims=True)
    img_ids = jnp.array([0, 0, 1, 1, 2, 2, 3, 3], dtype=jnp.int32)

    loss = triplet_loss(im, s, img_ids, seed=0)
    loss = jax.block_until_ready(loss)

    # Sanity: finite, non-negative, and bounded by (#positive pairs over both
    # directions) * (margin + 2) since |sim| <= 1 for unit-norm embeddings.
    ids_np = np.asarray(img_ids)
    n_pos_pairs = int((ids_np[None, :] == ids_np[:, None]).sum())
    upper = 2.0 * n_pos_pairs * (0.2 + 2.0)
    assert loss.shape == () and bool(jnp.isfinite(loss))
    assert 0.0 <= float(loss) <= upper
    print("KERNEL_OK")
</pallas_src>

<mosaic_0001>
module attributes {stable_mosaic.version = 11 : i64} {
  func.func @kernel(%arg0: i32, %arg1: i32, %arg2: memref<1xi32, #tpu.memory_space<smem>>, %arg3: memref<1x8x32xbf16, #tpu.memory_space<vmem>>, %arg4: memref<1x8x32xbf16, #tpu.memory_space<vmem>>, %arg5: memref<1x8xi32, #tpu.memory_space<vmem>>, %arg6: memref<8x1xi32, #tpu.memory_space<vmem>>, %arg7: memref<8x8xi32, #tpu.memory_space<vmem>>, %arg8: memref<1x1x1x8xf32, #tpu.memory_space<vmem>>, %arg9: memref<8x8xf32, #tpu.memory_space<vmem>>, %arg10: memref<8x8xf32, #tpu.memory_space<vmem>>) attributes {dimension_semantics = [#tpu.dimension_semantics<parallel>, #tpu.dimension_semantics<arbitrary>], iteration_bounds = array<i64: 2, 1>, scalar_prefetch = 1 : i64, scratch_operands = 2 : i64, tpu.core_type = #tpu.core_type<tc>, window_params = [{transform_indices = @transform_0, window_bounds = array<i64: 1, 8, 32>}, {transform_indices = @transform_1, window_bounds = array<i64: 1, 8, 32>}, {transform_indices = @transform_2, window_bounds = array<i64: 1, 8>}, {pipeline_mode = #tpu.pipeline_mode<synchronous>, transform_indices = @transform_3, window_bounds = array<i64: 8, 1>}, {transform_indices = @transform_4, window_bounds = array<i64: 8, 8>}, {transform_indices = @transform_5, window_bounds = array<i64: 1, 1, 1, 8>}]} {
    %c0 = arith.constant 0 : index
    %c0_0 = arith.constant 0 : index
    %c0_1 = arith.constant 0 : index
    %0 = vector.load %arg3[%c0, %c0_0, %c0_1] : memref<1x8x32xbf16, #tpu.memory_space<vmem>>, vector<1x8x32xbf16>
    %1 = vector.shape_cast %0 : vector<1x8x32xbf16> to vector<8x32xbf16>
    %c0_2 = arith.constant 0 : index
    %c0_3 = arith.constant 0 : index
    %c0_4 = arith.constant 0 : index
    %2 = vector.load %arg4[%c0_2, %c0_3, %c0_4] : memref<1x8x32xbf16, #tpu.memory_space<vmem>>, vector<1x8x32xbf16>
    %3 = vector.shape_cast %2 : vector<1x8x32xbf16> to vector<8x32xbf16>
    %cst = arith.constant dense<0.000000e+00> : vector<8x8xf32>
    %4 = tpu.matmul %3, %1, %cst {dimension_numbers = #tpu.dot_dimension_numbers<[1], [1], [0], [0], [0, 0, 1, 0], [], []>} : vector<8x32xbf16>, vector<8x32xbf16>, vector<8x8xf32> -> vector<8x8xf32>
    %c0_5 = arith.constant 0 : index
    %c0_6 = arith.constant 0 : index
    %5 = vector.load %arg5[%c0_5, %c0_6] : memref<1x8xi32, #tpu.memory_space<vmem>>, vector<1x8xi32>
    %c0_7 = arith.constant 0 : index
    %c0_8 = arith.constant 0 : index
    %6 = vector.load %arg6[%c0_7, %c0_8] : memref<8x1xi32, #tpu.memory_space<vmem>>, vector<8x1xi32>
    %7 = tpu.iota {dimensions = array<i32: 0>} : vector<8x8xi32>
    %8 = vector.broadcast %6 : vector<8x1xi32> to vector<8x8xi32>
    %9 = vector.broadcast %5 : vector<1x8xi32> to vector<8x8xi32>
    %10 = arith.cmpi ne, %8, %9 : vector<8x8xi32>
    %c8_i32 = arith.constant 8 : i32
    %11 = vector.broadcast %c8_i32 : i32 to vector<8x8xi32>
    %12 = arith.cmpi slt, %7, %11 : vector<8x8xi32>
    %13 = arith.andi %10, %12 : vector<8x8xi1>
    %cst_9 = arith.constant 1.000000e+00 : f32
    %cst_10 = arith.constant 0.000000e+00 : f32
    %14 = vector.broadcast %cst_9 : f32 to vector<8x8xf32>
    %15 = vector.broadcast %cst_10 : f32 to vector<8x8xf32>
    %16 = arith.select %13, %14, %15 : vector<8x8xi1>, vector<8x8xf32>
    %cst_11 = arith.constant 2.000000e+00 : f32
    %17 = vector.broadcast %cst_11 : f32 to vector<8x8xf32>
    %18 = arith.mulf %17, %4 : vector<8x8xf32>
    %cst_12 = arith.constant 2.000000e+00 : f32
    %19 = vector.broadcast %cst_12 : f32 to vector<8x8xf32>
    %20 = arith.subf %19, %18 : vector<8x8xf32>
    %21 = math.sqrt %20 : vector<8x8xf32>
    %cst_13 = arith.constant 5.000000e-01 : f32
    %22 = vector.broadcast %cst_13 : f32 to vector<8x8xf32>
    %23 = arith.maximumf %21, %22 : vector<8x8xf32>
    %24 = math.log %23 : vector<8x8xf32>
    %cst_14 = arith.constant -5.100000e+02 : f32
    %25 = vector.broadcast %cst_14 : f32 to vector<8x8xf32>
    %26 = arith.mulf %25, %24 : vector<8x8xf32>
    %27 = arith.mulf %23, %23 : vector<8x8xf32>
    %cst_15 = arith.constant 2.500000e-01 : f32
    %28 = vector.broadcast %cst_15 : f32 to vector<8x8xf32>
    %29 = arith.mulf %28, %27 : vector<8x8xf32>
    %cst_16 = arith.constant 1.000000e+00 : f32
    %30 = vector.broadcast %cst_16 : f32 to vector<8x8xf32>
    %31 = arith.subf %30, %29 : vector<8x8xf32>
    %32 = math.log %31 : vector<8x8xf32>
    %cst_17 = arith.constant 2.545000e+02 : f32
    %33 = vector.broadcast %cst_17 : f32 to vector<8x8xf32>
    %34 = arith.mulf %33, %32 : vector<8x8xf32>
    %35 = arith.subf %26, %34 : vector<8x8xf32>
    %36 = math.absf %35 : vector<8x8xf32>
    %cst_18 = arith.constant 0x7F800000 : f32
    %37 = vector.broadcast %cst_18 : f32 to vector<8x8xf32>
    %38 = arith.cmpf oeq, %36, %37 : vector<8x8xf32>
    %39 = arith.cmpf one, %35, %35 : vector<8x8xf32>
    %40 = arith.ori %38, %39 : vector<8x8xi1>
    %41 = arith.mulf %35, %16 : vector<8x8xf32>
    %cst_19 = arith.constant 0.000000e+00 : f32
    %42 = vector.broadcast %cst_19 : f32 to vector<8x8xf32>
    %43 = arith.select %40, %42, %41 : vector<8x8xi1>, vector<8x8xf32>
    %cst_20 = arith.constant dense<0xFF800000> : vector<8xf32>
    %44 = vector.multi_reduction <maximumf>, %43, %cst_20 [0] : vector<8x8xf32> to vector<8xf32>
    %45 = vector.shape_cast %44 : vector<8xf32> to vector<1x8xf32>
    %46 = vector.broadcast %45 : vector<1x8xf32> to vector<8x8xf32>
    %47 = arith.subf %43, %46 : vector<8x8xf32>
    %48 = math.exp %47 : vector<8x8xf32>
    %49 = arith.mulf %48, %16 : vector<8x8xf32>
    %cst_21 = arith.constant 1.700000e+00 : f32
    %50 = vector.broadcast %cst_21 : f32 to vector<8x8xf32>
    %51 = arith.cmpf olt, %23, %50 : vector<8x8xf32>
    %52 = arith.extui %51 : vector<8x8xi1> to vector<8x8xi32>
    %53 = arith.sitofp %52 : vector<8x8xi32> to vector<8x8xf32>
    %54 = arith.mulf %49, %53 : vector<8x8xf32>
    %cst_22 = arith.constant dense<0.000000e+00> : vector<8xf32>
    %55 = vector.multi_reduction <add>, %54, %cst_22 [0] : vector<8x8xf32> to vector<8xf32>
    %56 = vector.shape_cast %55 : vector<8xf32> to vector<1x8xf32>
    %cst_23 = arith.constant 0.000000e+00 : f32
    %57 = vector.broadcast %cst_23 : f32 to vector<1x8xf32>
    %58 = arith.cmpf ogt, %56, %57 : vector<1x8xf32>
    %59 = arith.extui %58 : vector<1x8xi1> to vector<1x8xi32>
    %60 = arith.sitofp %59 : vector<1x8xi32> to vector<1x8xf32>
    %c0_24 = arith.constant 0 : index
    %c0_25 = arith.constant 0 : index
    %61 = vector.load %arg9[%c0_24, %c0_25] : memref<8x8xf32, #tpu.memory_space<vmem>>, vector<8x8xf32>
    tpu.vector_store %arg9[%c0_24, %c0_25], %54 {strides = array<i32>} : memref<8x8xf32, #tpu.memory_space<vmem>>, vector<8x8xf32>,
    %c0_26 = arith.constant 0 : index
    %c0_27 = arith.constant 0 : index
    %62 = vector.load %arg10[%c0_26, %c0_27] : memref<8x8xf32, #tpu.memory_space<vmem>>, vector<8x8xf32>
    tpu.vector_store %arg10[%c0_26, %c0_27], %4 {strides = array<i32>} : memref<8x8xf32, #tpu.memory_space<vmem>>, vector<8x8xf32>,
    %63 = tpu.iota {dimensions = array<i32: 0>} : vector<8x8xi32>
    %64 = tpu.iota {dimensions = array<i32: 1>} : vector<8x8xi32>
    %c8_i32_28 = arith.constant 8 : i32
    %65 = arith.muli %arg0, %c8_i32_28 : i32
    %c8_i32_29 = arith.constant 8 : i32
    %66 = arith.muli %arg1, %c8_i32_29 : i32
    %67 = arith.addi %65, %66 : i32
    %68 = vector.broadcast %67 : i32 to vector<8x8xi32>
    %69 = arith.addi %68, %64 : vector<8x8xi32>
    %c8_i32_30 = arith.constant 8 : i32
    %70 = vector.broadcast %c8_i32_30 : i32 to vector<8x8xi32>
    %71 = arith.muli %69, %70 : vector<8x8xi32>
    %72 = arith.addi %71, %63 : vector<8x8xi32>
    %c-1640531527_i32 = arith.constant -1640531527 : i32
    %73 = vector.broadcast %c-1640531527_i32 : i32 to vector<8x8xi32>
    %74 = arith.muli %72, %73 : vector<8x8xi32>
    %c0_31 = arith.constant 0 : index
    %75 = memref.load %arg2[%c0_31] : memref<1xi32, #tpu.memory_space<smem>>
    %76 = vector.broadcast %75 : i32 to vector<8x8xi32>
    %77 = arith.addi %74, %76 : vector<8x8xi32>
    %c16_i32 = arith.constant 16 : i32
    %78 = vector.broadcast %c16_i32 : i32 to vector<8x8xi32>
    %79 = arith.shrsi %77, %78 : vector<8x8xi32>
    %c65535_i32 = arith.constant 65535 : i32
    %80 = vector.broadcast %c65535_i32 : i32 to vector<8x8xi32>
    %81 = arith.andi %79, %80 : vector<8x8xi32>
    %82 = arith.xori %77, %81 : vector<8x8xi32>
    %c-2048144789_i32 = arith.constant -2048144789 : i32
    %83 = vector.broadcast %c-2048144789_i32 : i32 to vector<8x8xi32>
    %84 = arith.muli %82, %83 : vector<8x8xi32>
    %c13_i32 = arith.constant 13 : i32
    %85 = vector.broadcast %c13_i32 : i32 to vector<8x8xi32>
    %86 = arith.shrsi %84, %85 : vector<8x8xi32>
    %c524287_i32 = arith.constant 524287 : i32
    %87 = vector.broadcast %c524287_i32 : i32 to vector<8x8xi32>
    %88 = arith.andi %86, %87 : vector<8x8xi32>
    %89 = arith.xori %84, %88 : vector<8x8xi32>
    %c-1028477387_i32 = arith.constant -1028477387 : i32
    %90 = vector.broadcast %c-1028477387_i32 : i32 to vector<8x8xi32>
    %91 = arith.muli %89, %90 : vector<8x8xi32>
    %c16_i32_32 = arith.constant 16 : i32
    %92 = vector.broadcast %c16_i32_32 : i32 to vector<8x8xi32>
    %93 = arith.shrsi %91, %92 : vector<8x8xi32>
    %c65535_i32_33 = arith.constant 65535 : i32
    %94 = vector.broadcast %c65535_i32_33 : i32 to vector<8x8xi32>
    %95 = arith.andi %93, %94 : vector<8x8xi32>
    %96 = arith.xori %91, %95 : vector<8x8xi32>
    %c8388607_i32 = arith.constant 8388607 : i32
    %97 = vector.broadcast %c8388607_i32 : i32 to vector<8x8xi32>
    %98 = arith.andi %96, %97 : vector<8x8xi32>
    %99 = arith.sitofp %98 : vector<8x8xi32> to vector<8x8xf32>
    %cst_34 = arith.constant 1.1920929E-7 : f32
    %100 = vector.broadcast %cst_34 : f32 to vector<8x8xf32>
    %101 = arith.mulf %99, %100 : vector<8x8xf32>
    %102 = vector.broadcast %56 : vector<1x8xf32> to vector<8x8xf32>
    %103 = arith.mulf %101, %102 : vector<8x8xf32>
    %cst_35 = arith.constant 0.000000e+00 : f32
    %104 = vector.broadcast %cst_35 : f32 to vector<8x8xf32>
    %c0_36 = arith.constant 0 : index
    %c0_37 = arith.constant 0 : index
    %105 = vector.load %arg10[%c0_36, %c0_37] : memref<8x8xf32, #tpu.memory_space<vmem>>, vector<1x8xf32>
    %106 = vector.broadcast %105 : vector<1x8xf32> to vector<8x8xf32>
    %107 = arith.addf %104, %106 : vector<8x8xf32>
    %cst_38 = arith.constant 0.000000e+00 : f32
    %108 = vector.broadcast %cst_38 : f32 to vector<1x8xf32>
    %c0_i32 = arith.constant 0 : i32
    %109 = arith.index_cast %c0_i32 : i32 to index
    %c0_39 = arith.constant 0 : index
    %110 = vector.load %arg9[%109, %c0_39] : memref<8x8xf32, #tpu.memory_space<vmem>>, vector<1x8xf32>
    %c1_i32 = arith.constant 1 : i32
    %111 = arith.addi %c0_i32, %c1_i32 : i32
    %112 = arith.index_cast %111 : i32 to index
    %c0_40 = arith.constant 0 : index
    %113 = vector.load %arg10[%112, %c0_40] : memref<8x8xf32, #tpu.memory_space<vmem>>, vector<1x8xf32>
    %114 = arith.addf %108, %110 : vector<1x8xf32>
    %115 = vector.broadcast %114 : vector<1x8xf32> to vector<8x8xf32>
    %116 = arith.cmpf ole, %115, %103 : vector<8x8xf32>
    %117 = vector.shape_cast %113 : vector<1x8xf32> to vector<1x8xf32>
    %118 = vector.broadcast %117 : vector<1x8xf32> to vector<8x8xf32>
    %119 = arith.select %116, %118, %107 : vector<8x8xi1>, vector<8x8xf32>
    %c1_i32_41 = arith.constant 1 : i32
    %120 = arith.index_cast %c1_i32_41 : i32 to index
    %c0_42 = arith.constant 0 : index
    %121 = vector.load %arg9[%120, %c0_42] : memref<8x8xf32, #tpu.memory_space<vmem>>, vector<1x8xf32>
    %c1_i32_43 = arith.constant 1 : i32
    %122 = arith.addi %c1_i32_41, %c1_i32_43 : i32
    %123 = arith.index_cast %122 : i32 to index
    %c0_44 = arith.constant 0 : index
    %124 = vector.load %arg10[%123, %c0_44] : memref<8x8xf32, #tpu.memory_space<vmem>>, vector<1x8xf32>
    %125 = arith.addf %114, %121 : vector<1x8xf32>
    %126 = vector.broadcast %125 : vector<1x8xf32> to vector<8x8xf32>
    %127 = arith.cmpf ole, %126, %103 : vector<8x8xf32>
    %128 = vector.shape_cast %124 : vector<1x8xf32> to vector<1x8xf32>
    %129 = vector.broadcast %128 : vector<1x8xf32> to vector<8x8xf32>
    %130 = arith.select %127, %129, %119 : vector<8x8xi1>, vector<8x8xf32>
    %c2_i32 = arith.constant 2 : i32
    %131 = arith.index_cast %c2_i32 : i32 to index
    %c0_45 = arith.constant 0 : index
    %132 = vector.load %arg9[%131, %c0_45] : memref<8x8xf32, #tpu.memory_space<vmem>>, vector<1x8xf32>
    %c1_i32_46 = arith.constant 1 : i32
    %133 = arith.addi %c2_i32, %c1_i32_46 : i32
    %134 = arith.index_cast %133 : i32 to index
    %c0_47 = arith.constant 0 : index
    %135 = vector.load %arg10[%134, %c0_47] : memref<8x8xf32, #tpu.memory_space<vmem>>, vector<1x8xf32>
    %136 = arith.addf %125, %132 : vector<1x8xf32>
    %137 = vector.broadcast %136 : vector<1x8xf32> to vector<8x8xf32>
    %138 = arith.cmpf ole, %137, %103 : vector<8x8xf32>
    %139 = vector.shape_cast %135 : vector<1x8xf32> to vector<1x8xf32>
    %140 = vector.broadcast %139 : vector<1x8xf32> to vector<8x8xf32>
    %141 = arith.select %138, %140, %130 : vector<8x8xi1>, vector<8x8xf32>
    %c3_i32 = arith.constant 3 : i32
    %142 = arith.index_cast %c3_i32 : i32 to index
    %c0_48 = arith.constant 0 : index
    %143 = vector.load %arg9[%142, %c0_48] : memref<8x8xf32, #tpu.memory_space<vmem>>, vector<1x8xf32>
    %c1_i32_49 = arith.constant 1 : i32
    %144 = arith.addi %c3_i32, %c1_i32_49 : i32
    %145 = arith.index_cast %144 : i32 to index
    %c0_50 = arith.constant 0 : index
    %146 = vector.load %arg10[%145, %c0_50] : memref<8x8xf32, #tpu.memory_space<vmem>>, vector<1x8xf32>
    %147 = arith.addf %136, %143 : vector<1x8xf32>
    %148 = vector.broadcast %147 : vector<1x8xf32> to vector<8x8xf32>
    %149 = arith.cmpf ole, %148, %103 : vector<8x8xf32>
    %150 = vector.shape_cast %146 : vector<1x8xf32> to vector<1x8xf32>
    %151 = vector.broadcast %150 : vector<1x8xf32> to vector<8x8xf32>
    %152 = arith.select %149, %151, %141 : vector<8x8xi1>, vector<8x8xf32>
    %c4_i32 = arith.constant 4 : i32
    %153 = arith.index_cast %c4_i32 : i32 to index
    %c0_51 = arith.constant 0 : index
    %154 = vector.load %arg9[%153, %c0_51] : memref<8x8xf32, #tpu.memory_space<vmem>>, vector<1x8xf32>
    %c1_i32_52 = arith.constant 1 : i32
    %155 = arith.addi %c4_i32, %c1_i32_52 : i32
    %156 = arith.index_cast %155 : i32 to index
    %c0_53 = arith.constant 0 : index
    %157 = vector.load %arg10[%156, %c0_53] : memref<8x8xf32, #tpu.memory_space<vmem>>, vector<1x8xf32>
    %158 = arith.addf %147, %154 : vector<1x8xf32>
    %159 = vector.broadcast %158 : vector<1x8xf32> to vector<8x8xf32>
    %160 = arith.cmpf ole, %159, %103 : vector<8x8xf32>
    %161 = vector.shape_cast %157 : vector<1x8xf32> to vector<1x8xf32>
    %162 = vector.broadcast %161 : vector<1x8xf32> to vector<8x8xf32>
    %163 = arith.select %160, %162, %152 : vector<8x8xi1>, vector<8x8xf32>
    %c5_i32 = arith.constant 5 : i32
    %164 = arith.index_cast %c5_i32 : i32 to index
    %c0_54 = arith.constant 0 : index
    %165 = vector.load %arg9[%164, %c0_54] : memref<8x8xf32, #tpu.memory_space<vmem>>, vector<1x8xf32>
    %c1_i32_55 = arith.constant 1 : i32
    %166 = arith.addi %c5_i32, %c1_i32_55 : i32
    %167 = arith.index_cast %166 : i32 to index
    %c0_56 = arith.constant 0 : index
    %168 = vector.load %arg10[%167, %c0_56] : memref<8x8xf32, #tpu.memory_space<vmem>>, vector<1x8xf32>
    %169 = arith.addf %158, %165 : vector<1x8xf32>
    %170 = vector.broadcast %169 : vector<1x8xf32> to vector<8x8xf32>
    %171 = arith.cmpf ole, %170, %103 : vector<8x8xf32>
    %172 = vector.shape_cast %168 : vector<1x8xf32> to vector<1x8xf32>
    %173 = vector.broadcast %172 : vector<1x8xf32> to vector<8x8xf32>
    %174 = arith.select %171, %173, %163 : vector<8x8xi1>, vector<8x8xf32>
    %c6_i32 = arith.constant 6 : i32
    %175 = arith.index_cast %c6_i32 : i32 to index
    %c0_57 = arith.constant 0 : index
    %176 = vector.load %arg9[%175, %c0_57] : memref<8x8xf32, #tpu.memory_space<vmem>>, vector<1x8xf32>
    %c1_i32_58 = arith.constant 1 : i32
    %177 = arith.addi %c6_i32, %c1_i32_58 : i32
    %178 = arith.index_cast %177 : i32 to index
    %c0_59 = arith.constant 0 : index
    %179 = vector.load %arg10[%178, %c0_59] : memref<8x8xf32, #tpu.memory_space<vmem>>, vector<1x8xf32>
    %180 = arith.addf %169, %176 : vector<1x8xf32>
    %181 = vector.broadcast %180 : vector<1x8xf32> to vector<8x8xf32>
    %182 = arith.cmpf ole, %181, %103 : vector<8x8xf32>
    %183 = vector.shape_cast %179 : vector<1x8xf32> to vector<1x8xf32>
    %184 = vector.broadcast %183 : vector<1x8xf32> to vector<8x8xf32>
    %185 = arith.select %182, %184, %174 : vector<8x8xi1>, vector<8x8xf32>
    %c7_i32 = arith.constant 7 : i32
    %c0_60 = arith.constant 0 : index
    %c0_61 = arith.constant 0 : index
    %186 = vector.load %arg10[%c0_60, %c0_61] : memref<8x8xf32, #tpu.memory_space<vmem>>, vector<8x8xf32>
    %cst_62 = arith.constant 0.000000e+00 : f32
    %187 = vector.broadcast %cst_62 : f32 to vector<1x8xf32>
    %c0_63 = arith.constant 0 : index
    %c0_64 = arith.constant 0 : index
    %188 = vector.load %arg7[%c0_63, %c0_64] : memref<8x8xi32, #tpu.memory_space<vmem>>, vector<1x8xi32>
    %189 = vector.broadcast %188 : vector<1x8xi32> to vector<8x8xi32>
    %190 = arith.cmpi eq, %7, %189 : vector<8x8xi32>
    %cst_65 = arith.constant 0.000000e+00 : f32
    %191 = vector.broadcast %cst_65 : f32 to vector<8x8xf32>
    %192 = arith.select %190, %186, %191 : vector<8x8xi1>, vector<8x8xf32>
    %cst_66 = arith.constant dense<0.000000e+00> : vector<8xf32>
    %193 = vector.multi_reduction <add>, %192, %cst_66 [0] : vector<8x8xf32> to vector<8xf32>
    %194 = vector.shape_cast %193 : vector<8xf32> to vector<1x8xf32>
    %c0_i32_67 = arith.constant 0 : i32
    %195 = vector.broadcast %c0_i32_67 : i32 to vector<1x8xi32>
    %196 = arith.cmpi sge, %188, %195 : vector<1x8xi32>
    %197 = arith.extui %196 : vector<1x8xi1> to vector<1x8xi32>
    %198 = arith.sitofp %197 : vector<1x8xi32> to vector<1x8xf32>
    %199 = arith.mulf %198, %60 : vector<1x8xf32>
    %200 = vector.extract_strided_slice %185 {offsets = [0, 0], sizes = [1, 8], strides = [1, 1]} : vector<8x8xf32> to vector<1x8xf32>
    %cst_68 = arith.constant 2.000000e-01 : f32
    %201 = vector.broadcast %cst_68 : f32 to vector<1x8xf32>
    %202 = arith.addf %201, %200 : vector<1x8xf32>
    %203 = arith.subf %202, %194 : vector<1x8xf32>
    %cst_69 = arith.constant 0.000000e+00 : f32
    %204 = vector.broadcast %cst_69 : f32 to vector<1x8xf32>
    %205 = arith.maximumf %203, %204 : vector<1x8xf32>
    %206 = arith.mulf %199, %205 : vector<1x8xf32>
    %207 = arith.addf %187, %206 : vector<1x8xf32>
    %c1 = arith.constant 1 : index
    %c0_70 = arith.constant 0 : index
    %208 = vector.load %arg7[%c1, %c0_70] : memref<8x8xi32, #tpu.memory_space<vmem>>, vector<1x8xi32>
    %209 = vector.broadcast %208 : vector<1x8xi32> to vector<8x8xi32>
    %210 = arith.cmpi eq, %7, %209 : vector<8x8xi32>
    %cst_71 = arith.constant 0.000000e+00 : f32
    %211 = vector.broadcast %cst_71 : f32 to vector<8x8xf32>
    %212 = arith.select %210, %186, %211 : vector<8x8xi1>, vector<8x8xf32>
    %cst_72 = arith.constant dense<0.000000e+00> : vector<8xf32>
    %213 = vector.multi_reduction <add>, %212, %cst_72 [0] : vector<8x8xf32> to vector<8xf32>
    %214 = vector.shape_cast %213 : vector<8xf32> to vector<1x8xf32>
    %c0_i32_73 = arith.constant 0 : i32
    %215 = vector.broadcast %c0_i32_73 : i32 to vector<1x8xi32>
    %216 = arith.cmpi sge, %208, %215 : vector<1x8xi32>
    %217 = arith.extui %216 : vector<1x8xi1> to vector<1x8xi32>
    %218 = arith.sitofp %217 : vector<1x8xi32> to vector<1x8xf32>
    %219 = arith.mulf %218, %60 : vector<1x8xf32>
    %220 = vector.extract_strided_slice %185 {offsets = [1, 0], sizes = [1, 8], strides = [1, 1]} : vector<8x8xf32> to vector<1x8xf32>
    %cst_74 = arith.constant 2.000000e-01 : f32
    %221 = vector.broadcast %cst_74 : f32 to vector<1x8xf32>
    %222 = arith.addf %221, %220 : vector<1x8xf32>
    %223 = arith.subf %222, %214 : vector<1x8xf32>
    %cst_75 = arith.constant 0.000000e+00 : f32
    %224 = vector.broadcast %cst_75 : f32 to vector<1x8xf32>
    %225 = arith.maximumf %223, %224 : vector<1x8xf32>
    %226 = arith.mulf %219, %225 : vector<1x8xf32>
    %227 = arith.addf %207, %226 : vector<1x8xf32>
    %c2 = arith.constant 2 : index
    %c0_76 = arith.constant 0 : index
    %228 = vector.load %arg7[%c2, %c0_76] : memref<8x8xi32, #tpu.memory_space<vmem>>, vector<1x8xi32>
    %229 = vector.broadcast %228 : vector<1x8xi32> to vector<8x8xi32>
    %230 = arith.cmpi eq, %7, %229 : vector<8x8xi32>
    %cst_77 = arith.constant 0.000000e+00 : f32
    %231 = vector.broadcast %cst_77 : f32 to vector<8x8xf32>
    %232 = arith.select %230, %186, %231 : vector<8x8xi1>, vector<8x8xf32>
    %cst_78 = arith.constant dense<0.000000e+00> : vector<8xf32>
    %233 = vector.multi_reduction <add>, %232, %cst_78 [0] : vector<8x8xf32> to vector<8xf32>
    %234 = vector.shape_cast %233 : vector<8xf32> to vector<1x8xf32>
    %c0_i32_79 = arith.constant 0 : i32
    %235 = vector.broadcast %c0_i32_79 : i32 to vector<1x8xi32>
    %236 = arith.cmpi sge, %228, %235 : vector<1x8xi32>
    %237 = arith.extui %236 : vector<1x8xi1> to vector<1x8xi32>
    %238 = arith.sitofp %237 : vector<1x8xi32> to vector<1x8xf32>
    %239 = arith.mulf %238, %60 : vector<1x8xf32>
    %240 = vector.extract_strided_slice %185 {offsets = [2, 0], sizes = [1, 8], strides = [1, 1]} : vector<8x8xf32> to vector<1x8xf32>
    %cst_80 = arith.constant 2.000000e-01 : f32
    %241 = vector.broadcast %cst_80 : f32 to vector<1x8xf32>
    %242 = arith.addf %241, %240 : vector<1x8xf32>
    %243 = arith.subf %242, %234 : vector<1x8xf32>
    %cst_81 = arith.constant 0.000000e+00 : f32
    %244 = vector.broadcast %cst_81 : f32 to vector<1x8xf32>
    %245 = arith.maximumf %243, %244 : vector<1x8xf32>
    %246 = arith.mulf %239, %245 : vector<1x8xf32>
    %247 = arith.addf %227, %246 : vector<1x8xf32>
    %c3 = arith.constant 3 : index
    %c0_82 = arith.constant 0 : index
    %248 = vector.load %arg7[%c3, %c0_82] : memref<8x8xi32, #tpu.memory_space<vmem>>, vector<1x8xi32>
    %249 = vector.broadcast %248 : vector<1x8xi32> to vector<8x8xi32>
    %250 = arith.cmpi eq, %7, %249 : vector<8x8xi32>
    %cst_83 = arith.constant 0.000000e+00 : f32
    %251 = vector.broadcast %cst_83 : f32 to vector<8x8xf32>
    %252 = arith.select %250, %186, %251 : vector<8x8xi1>, vector<8x8xf32>
    %cst_84 = arith.constant dense<0.000000e+00> : vector<8xf32>
    %253 = vector.multi_reduction <add>, %252, %cst_84 [0] : vector<8x8xf32> to vector<8xf32>
    %254 = vector.shape_cast %253 : vector<8xf32> to vector<1x8xf32>
    %c0_i32_85 = arith.constant 0 : i32
    %255 = vector.broadcast %c0_i32_85 : i32 to vector<1x8xi32>
    %256 = arith.cmpi sge, %248, %255 : vector<1x8xi32>
    %257 = arith.extui %256 : vector<1x8xi1> to vector<1x8xi32>
    %258 = arith.sitofp %257 : vector<1x8xi32> to vector<1x8xf32>
    %259 = arith.mulf %258, %60 : vector<1x8xf32>
    %260 = vector.extract_strided_slice %185 {offsets = [3, 0], sizes = [1, 8], strides = [1, 1]} : vector<8x8xf32> to vector<1x8xf32>
    %cst_86 = arith.constant 2.000000e-01 : f32
    %261 = vector.broadcast %cst_86 : f32 to vector<1x8xf32>
    %262 = arith.addf %261, %260 : vector<1x8xf32>
    %263 = arith.subf %262, %254 : vector<1x8xf32>
    %cst_87 = arith.constant 0.000000e+00 : f32
    %264 = vector.broadcast %cst_87 : f32 to vector<1x8xf32>
    %265 = arith.maximumf %263, %264 : vector<1x8xf32>
    %266 = arith.mulf %259, %265 : vector<1x8xf32>
    %267 = arith.addf %247, %266 : vector<1x8xf32>
    %c4 = arith.constant 4 : index
    %c0_88 = arith.constant 0 : index
    %268 = vector.load %arg7[%c4, %c0_88] : memref<8x8xi32, #tpu.memory_space<vmem>>, vector<1x8xi32>
    %269 = vector.broadcast %268 : vector<1x8xi32> to vector<8x8xi32>
    %270 = arith.cmpi eq, %7, %269 : vector<8x8xi32>
    %cst_89 = arith.constant 0.000000e+00 : f32
    %271 = vector.broadcast %cst_89 : f32 to vector<8x8xf32>
    %272 = arith.select %270, %186, %271 : vector<8x8xi1>, vector<8x8xf32>
    %cst_90 = arith.constant dense<0.000000e+00> : vector<8xf32>
    %273 = vector.multi_reduction <add>, %272, %cst_90 [0] : vector<8x8xf32> to vector<8xf32>
    %274 = vector.shape_cast %273 : vector<8xf32> to vector<1x8xf32>
    %c0_i32_91 = arith.constant 0 : i32
    %275 = vector.broadcast %c0_i32_91 : i32 to vector<1x8xi32>
    %276 = arith.cmpi sge, %268, %275 : vector<1x8xi32>
    %277 = arith.extui %276 : vector<1x8xi1> to vector<1x8xi32>
    %278 = arith.sitofp %277 : vector<1x8xi32> to vector<1x8xf32>
    %279 = arith.mulf %278, %60 : vector<1x8xf32>
    %280 = vector.extract_strided_slice %185 {offsets = [4, 0], sizes = [1, 8], strides = [1, 1]} : vector<8x8xf32> to vector<1x8xf32>
    %cst_92 = arith.constant 2.000000e-01 : f32
    %281 = vector.broadcast %cst_92 : f32 to vector<1x8xf32>
    %282 = arith.addf %281, %280 : vector<1x8xf32>
    %283 = arith.subf %282, %274 : vector<1x8xf32>
    %cst_93 = arith.constant 0.000000e+00 : f32
    %284 = vector.broadcast %cst_93 : f32 to vector<1x8xf32>
    %285 = arith.maximumf %283, %284 : vector<1x8xf32>
    %286 = arith.mulf %279, %285 : vector<1x8xf32>
    %287 = arith.addf %267, %286 : vector<1x8xf32>
    %c5 = arith.constant 5 : index
    %c0_94 = arith.constant 0 : index
    %288 = vector.load %arg7[%c5, %c0_94] : memref<8x8xi32, #tpu.memory_space<vmem>>, vector<1x8xi32>
    %289 = vector.broadcast %288 : vector<1x8xi32> to vector<8x8xi32>
    %290 = arith.cmpi eq, %7, %289 : vector<8x8xi32>
    %cst_95 = arith.constant 0.000000e+00 : f32
    %291 = vector.broadcast %cst_95 : f32 to vector<8x8xf32>
    %292 = arith.select %290, %186, %291 : vector<8x8xi1>, vector<8x8xf32>
    %cst_96 = arith.constant dense<0.000000e+00> : vector<8xf32>
    %293 = vector.multi_reduction <add>, %292, %cst_96 [0] : vector<8x8xf32> to vector<8xf32>
    %294 = vector.shape_cast %293 : vector<8xf32> to vector<1x8xf32>
    %c0_i32_97 = arith.constant 0 : i32
    %295 = vector.broadcast %c0_i32_97 : i32 to vector<1x8xi32>
    %296 = arith.cmpi sge, %288, %295 : vector<1x8xi32>
    %297 = arith.extui %296 : vector<1x8xi1> to vector<1x8xi32>
    %298 = arith.sitofp %297 : vector<1x8xi32> to vector<1x8xf32>
    %299 = arith.mulf %298, %60 : vector<1x8xf32>
    %300 = vector.extract_strided_slice %185 {offsets = [5, 0], sizes = [1, 8], strides = [1, 1]} : vector<8x8xf32> to vector<1x8xf32>
    %cst_98 = arith.constant 2.000000e-01 : f32
    %301 = vector.broadcast %cst_98 : f32 to vector<1x8xf32>
    %302 = arith.addf %301, %300 : vector<1x8xf32>
    %303 = arith.subf %302, %294 : vector<1x8xf32>
    %cst_99 = arith.constant 0.000000e+00 : f32
    %304 = vector.broadcast %cst_99 : f32 to vector<1x8xf32>
    %305 = arith.maximumf %303, %304 : vector<1x8xf32>
    %306 = arith.mulf %299, %305 : vector<1x8xf32>
    %307 = arith.addf %287, %306 : vector<1x8xf32>
    %c6 = arith.constant 6 : index
    %c0_100 = arith.constant 0 : index
    %308 = vector.load %arg7[%c6, %c0_100] : memref<8x8xi32, #tpu.memory_space<vmem>>, vector<1x8xi32>
    %309 = vector.broadcast %308 : vector<1x8xi32> to vector<8x8xi32>
    %310 = arith.cmpi eq, %7, %309 : vector<8x8xi32>
    %cst_101 = arith.constant 0.000000e+00 : f32
    %311 = vector.broadcast %cst_101 : f32 to vector<8x8xf32>
    %312 = arith.select %310, %186, %311 : vector<8x8xi1>, vector<8x8xf32>
    %cst_102 = arith.constant dense<0.000000e+00> : vector<8xf32>
    %313 = vector.multi_reduction <add>, %312, %cst_102 [0] : vector<8x8xf32> to vector<8xf32>
    %314 = vector.shape_cast %313 : vector<8xf32> to vector<1x8xf32>
    %c0_i32_103 = arith.constant 0 : i32
    %315 = vector.broadcast %c0_i32_103 : i32 to vector<1x8xi32>
    %316 = arith.cmpi sge, %308, %315 : vector<1x8xi32>
    %317 = arith.extui %316 : vector<1x8xi1> to vector<1x8xi32>
    %318 = arith.sitofp %317 : vector<1x8xi32> to vector<1x8xf32>
    %319 = arith.mulf %318, %60 : vector<1x8xf32>
    %320 = vector.extract_strided_slice %185 {offsets = [6, 0], sizes = [1, 8], strides = [1, 1]} : vector<8x8xf32> to vector<1x8xf32>
    %cst_104 = arith.constant 2.000000e-01 : f32
    %321 = vector.broadcast %cst_104 : f32 to vector<1x8xf32>
    %322 = arith.addf %321, %320 : vector<1x8xf32>
    %323 = arith.subf %322, %314 : vector<1x8xf32>
    %cst_105 = arith.constant 0.000000e+00 : f32
    %324 = vector.broadcast %cst_105 : f32 to vector<1x8xf32>
    %325 = arith.maximumf %323, %324 : vector<1x8xf32>
    %326 = arith.mulf %319, %325 : vector<1x8xf32>
    %327 = arith.addf %307, %326 : vector<1x8xf32>
    %c7 = arith.constant 7 : index
    %c0_106 = arith.constant 0 : index
    %328 = vector.load %arg7[%c7, %c0_106] : memref<8x8xi32, #tpu.memory_space<vmem>>, vector<1x8xi32>
    %329 = vector.broadcast %328 : vector<1x8xi32> to vector<8x8xi32>
    %330 = arith.cmpi eq, %7, %329 : vector<8x8xi32>
    %cst_107 = arith.constant 0.000000e+00 : f32
    %331 = vector.broadcast %cst_107 : f32 to vector<8x8xf32>
    %332 = arith.select %330, %186, %331 : vector<8x8xi1>, vector<8x8xf32>
    %cst_108 = arith.constant dense<0.000000e+00> : vector<8xf32>
    %333 = vector.multi_reduction <add>, %332, %cst_108 [0] : vector<8x8xf32> to vector<8xf32>
    %334 = vector.shape_cast %333 : vector<8xf32> to vector<1x8xf32>
    %c0_i32_109 = arith.constant 0 : i32
    %335 = vector.broadcast %c0_i32_109 : i32 to vector<1x8xi32>
    %336 = arith.cmpi sge, %328, %335 : vector<1x8xi32>
    %337 = arith.extui %336 : vector<1x8xi1> to vector<1x8xi32>
    %338 = arith.sitofp %337 : vector<1x8xi32> to vector<1x8xf32>
    %339 = arith.mulf %338, %60 : vector<1x8xf32>
    %340 = vector.extract_strided_slice %185 {offsets = [7, 0], sizes = [1, 8], strides = [1, 1]} : vector<8x8xf32> to vector<1x8xf32>
    %cst_110 = arith.constant 2.000000e-01 : f32
    %341 = vector.broadcast %cst_110 : f32 to vector<1x8xf32>
    %342 = arith.addf %341, %340 : vector<1x8xf32>
    %343 = arith.subf %342, %334 : vector<1x8xf32>
    %cst_111 = arith.constant 0.000000e+00 : f32
    %344 = vector.broadcast %cst_111 : f32 to vector<1x8xf32>
    %345 = arith.maximumf %343, %344 : vector<1x8xf32>
    %346 = arith.mulf %339, %345 : vector<1x8xf32>
    %347 = arith.addf %327, %346 : vector<1x8xf32>
    %348 = vector.shape_cast %347 : vector<1x8xf32> to vector<1x1x1x8xf32>
    %c0_112 = arith.constant 0 : index
    %c0_113 = arith.constant 0 : index
    %c0_114 = arith.constant 0 : index
    %c0_115 = arith.constant 0 : index
    %349 = vector.load %arg8[%c0_112, %c0_113, %c0_114, %c0_115] : memref<1x1x1x8xf32, #tpu.memory_space<vmem>>, vector<1x1x1x8xf32>
    tpu.vector_store %arg8[%c0_112, %c0_113, %c0_114, %c0_115], %348 {strides = array<i32>} : memref<1x1x1x8xf32, #tpu.memory_space<vmem>>, vector<1x1x1x8xf32>,
    return
  }
  func.func @transform_0(%arg0: i32, %arg1: i32, %arg2: memref<1xi32, #tpu.memory_space<smem>>) -> (i32, i32, i32) {
    %c0_i32 = arith.constant 0 : i32
    %c0_i32_0 = arith.constant 0 : i32
    return %arg0, %arg1, %c0_i32 : i32, i32, i32
  }
  func.func @transform_1(%arg0: i32, %arg1: i32, %arg2: memref<1xi32, #tpu.memory_space<smem>>) -> (i32, i32, i32) {
    %c1_i32 = arith.constant 1 : i32
    %0 = arith.subi %c1_i32, %arg0 : i32
    %c0_i32 = arith.constant 0 : i32
    %c0_i32_0 = arith.constant 0 : i32
    %c0_i32_1 = arith.constant 0 : i32
    return %0, %c0_i32, %c0_i32_0 : i32, i32, i32
  }
  func.func @transform_2(%arg0: i32, %arg1: i32, %arg2: memref<1xi32, #tpu.memory_space<smem>>) -> (i32, i32) {
    %c0_i32 = arith.constant 0 : i32
    %c0_i32_0 = arith.constant 0 : i32
    return %c0_i32, %arg1 : i32, i32
  }
  func.func @transform_3(%arg0: i32, %arg1: i32, %arg2: memref<1xi32, #tpu.memory_space<smem>>) -> (i32, i32) {
    %c0_i32 = arith.constant 0 : i32
    %c0_i32_0 = arith.constant 0 : i32
    %c0_i32_1 = arith.constant 0 : i32
    return %c0_i32, %c0_i32_0 : i32, i32
  }
  func.func @transform_4(%arg0: i32, %arg1: i32, %arg2: memref<1xi32, #tpu.memory_space<smem>>) -> (i32, i32) {
    %c0_i32 = arith.constant 0 : i32
    %c0_i32_0 = arith.constant 0 : i32
    return %c0_i32, %arg1 : i32, i32
  }
  func.func @transform_5(%arg0: i32, %arg1: i32, %arg2: memref<1xi32, #tpu.memory_space<smem>>) -> (i32, i32, i32, i32) {
    %c0_i32 = arith.constant 0 : i32
    %c0_i32_0 = arith.constant 0 : i32
    %c0_i32_1 = arith.constant 0 : i32
    return %arg0, %arg1, %c0_i32, %c0_i32_0 : i32, i32, i32, i32
  }
}

</mosaic_0001>

<bundles_post_ra>
// kernel: tpu_custom_call.1
= control target key start
LH: loop header
LB: loop body
LE: loop exit
PB: predicated region body
PF: predicated region fallthrough
CT: control target
= control target key end

     0   :  { %s1643_s0 = inlined_call_operand.<no memory space> [shape: s32[1], index: 0, kind: input, shape index: {}]   ;;  %s1644_s1 = inlined_call_operand.vmem [shape: bf16[2,8,32], index: 1, kind: input, shape index: {}]   ;;  %s1645_s2 = inlined_call_operand.hbm [shape: bf16[2,8,32], index: 2, kind: input, shape index: {}]   ;;  %s1646_s3 = inlined_call_operand.hbm [shape: s32[1,8], index: 3, kind: input, shape index: {}]   ;;  %s1647_s4 = inlined_call_operand.vmem [shape: s32[8,1], index: 4, kind: input, shape index: {}]   ;;  %s1648_s5 = inlined_call_operand.vmem [shape: s32[8,8], index: 5, kind: input, shape index: {}]   ;;  %s1649_s6 = inlined_call_operand.hbm [shape: f32[2,1,1,8], index: 6, kind: output, shape index: {}]  }
   0x1   :  { %1654 = sst [smem:[#allocation17_spill]] %s1646_s3 }
   0x2   :  { %1655 = sst [smem:[#allocation18_spill]] %s1649_s6 }
   0x3   :  { %11 = sst [smem:[#allocation5]] %s1643_s0 }
   0x4   :  { %12 = vsyncpa [#allocation7], 0 }
   0x5   :  { %14 = vsyncpa [#allocation7 + $0x1], 0 }
   0x6   :  { %15 = vsyncpa [#allocation10], 0 }
   0x7   :  { %16 = vsyncpa [#allocation8], 0 }
   0x8   :  { %18 = vsyncpa [#allocation8 + $0x1], 0  ;;  %s1264_s23 = smov 0   ;;  %s1266_s24 = smov 0  }
   0x9   :  { %s1268_s25 = smov 0   ;;  %s1270_s26 = smov 0  }
   0xa   :  { %s1272_s27 = smov 0   ;;  %s1274_s28 = smov 0  }
   0xb   :  { %s1276_s29 = smov 0   ;;  %s1278_s0 = smov 0  }
   0xc   :  { %s1280_s30 = smov 0  }
   0xd LB: > { %1656 = sst [smem:[#allocation15_spill]] %s1186_s23  ;;  %s900_s7 = sadd.s32 4294967295, %s1218_s30   ;;  %s1218_s30 = sphi %s1280_s30, %s24_s30   ;;  %s1214_s0 = sphi %s1278_s0, %s1695_s0   ;;  %s1210_s29 = sphi %s1276_s29, %s1694_s29   ;;  %s1206_s28 = sphi %s1274_s28, %s1693_s28   ;;  %s1202_s27 = sphi %s1272_s27, %s1692_s27   ;;  %s1198_s26 = sphi %s1270_s26, %s1691_s26   ;;  %s1194_s25 = sphi %s1268_s25, %s1690_s25   ;;  %s1190_s24 = sphi %s1266_s24, %s1689_s24   ;;  %s1186_s23 = sphi %s1264_s23, %s1688_s23  }
   0xe   : > { %s901_s8 = sadd.s32 4294967294, %s1218_s30   ;;  %p86_p0 = scmp.ne.s32.totalorder %s1202_s27, %s1198_s26 }
   0xf   : > { %p1310_p1 = scmp.eq.s32.totalorder %s900_s7, 0  ;;  %p184_p2 = scmp.ne.s32.totalorder %s1194_s25, %s1190_s24 }
  0x10   : > { %p185_p3 = scmp.eq.s32.totalorder %s900_s7, 1  ;;  %p190_p5 = scmp.ne.s32.totalorder %s1190_s24, %s1186_s23 }
  0x11   : > { %p1318_p4 = por %p1310_p1, %p86_p0  ;;  %p191_p7 = scmp.eq.s32.totalorder %s901_s8, 1 }
  0x12   : > { %p1324_p6 = por %p185_p3, %p184_p2  ;;  %p902_p8 = scmp.ge.s32.totalorder %s1218_s30, 1 }
  0x13   : > { %p198_p9 = scmp.lt.s32.totalorder %s1218_s30, 3  ;;  %p1330_p10 = por %p191_p7, %p190_p5 }
  0x14   : > { %s1659_s11 = scalar_select %p1324_p6, 1, 0 }
  0x15   : > { %s1660_s12 = scalar_select %p1330_p10, 1, 0 }
  0x16   : > { %p1334_p11 = pnand %p902_p8, %p198_p9  ;;  %s1220_s14 = smov [#allocation9]  }
  0x17   : > { %1661 = sst [smem:[#allocation16_spill]] %s1660_s12  ;;  %s213_s15 = sshll.u32 %s1220_s14, 4  ;;  %s214_s15 = int_to_ptr.vmem [resolvable:$true] %s213_s15 }
  0x18   : > { %p955_p13 = pneg %p1334_p11  ;;  %s36_s17 = sadd.s32 1, %s1214_s0 }
  0x19   : > { %p38_p2 = scmp.ge.s32.totalorder %s36_s17, 2  ;;  %s1067_s18 = scalar_lea.vmem %s214_s15, 16 }
  0x1a   : > { %p1343_p0 = pnand %p955_p13, %p1310_p1  ;;  %p1068_p5 = scmp.ne.s32.totalorder %s214_s15, %s1067_s18 }
  0x1b   : > { %s1074_s19 = scalar_lea.vmem %s214_s15, 32  ;;  %p1075_p9 = scmp.lt.s32.totalorder %s214_s15, %s214_s15 }
  0x1c   : > { %p1058_p3 = pneg %p1343_p0  ;;  %p1076_p12 = scmp.lt.s32.totalorder %s1074_s19, %s1067_s18 }
  0x1e   : > { %p1070_p7 = pnand %p1068_p5, %p1058_p3  ;;  %p1077_p10 = por %p1076_p12, %p1075_p9 }
  0x20   : > { %p1071_p8 = pneg %p1070_p7 }
  0x22   : > { %p1078_p6 = pnand %p1077_p10, %p1071_p8 }
  0x24   : > { %1081 = shalt.err (!%p1078_p6)
}
  0x25   : > { %s1664_s3 = sld [smem:[#allocation17_spill]]  ;;  %s1697_s17 = smov (%p38_p2, %s36_s17), 0 }
  0x26   : > { %s68_s22 = ssub.s32 1, %s1214_s0  ;;  %s73_s26 = sadd.s32 1, %s1206_s28 }
  0x27   : > { %s69_s7 = ssub.s32 1, %s1697_s17  ;;  %p80_p6 = scmp.ne.s32.totalorder %s1206_s28, %s1202_s27 }
  0x28   : > { %s70_s8 = ssub.s32 %s68_s22, %s69_s7  ;;  %p81_p10 = scmp.eq.s32.totalorder %s1218_s30, 0 }
  0x29   : > { %p71_p12 = scmp.eq.s32.totalorder %s70_s8, 0  ;;  %s169_s14 = ssub.s32 %s1214_s0, %s1697_s17 }
  0x2a   : > { %p82_p13 = por %p81_p10, %p80_p6  ;;  %p172_p3 = scmp.eq.s32.totalorder %s169_s14, 0 }
  0x2b   : > { %958 = dma.hbm_to_vmem [thread:$0]  (!%p1343_p0), %s1664_s3, 16, %s214_s15, [#allocation10]  }
  0x2c   : > { %s1366_s16 = scalar_select %p71_p12, %s1206_s28, %s73_s26  }
  0x2d   : > { %s174_s18 = sadd.s32 1, %s1194_s25  ;;  %p968_p5 = scmp.lt.s32.totalorder %s1218_s30, 2 }
  0x2e   : > { %s1371_s15 = scalar_select %p172_p3, %s1194_s25, %s174_s18  }
  0x2f   : > { %s244_s19 = sand.u32 1, %s1206_s28   ;;  %s907_s20 = sshll.u32 %s68_s22, 6 }
  0x30   : > { %s906_s21 = sshll.u32 %s244_s19, 2  ;;  %s254_s23 = scalar_lea.hbm %s1645_s2, %s907_s20 }
  0x31   : > { %s248_s6 = scalar_lea.vmem [#allocation6], %s906_s21  ;;  %p1377_p0 = pnand %p968_p5, %p82_p13 }
  0x32   : > { %s256_s7 = sshll.u32 %s248_s6, 4  ;;  %s245_s26 = scalar_lea.sflag [#allocation7], %s244_s19  ;;  %s257_s7 = int_to_ptr.vmem [resolvable:$true] %s256_s7 }
  0x33   : > { %p1084_p2 = pneg %p1377_p0  ;;  %s1095_s14 = scalar_lea.vmem %s257_s7, 64 }
  0x34   : > { %p1096_p7 = scmp.ne.s32.totalorder %s257_s7, %s1095_s14  ;;  %s1221_s22 = smov [#allocation6]  }
  0x35   : > { %s1100_s18 = sshll.u32 %s1221_s22, 4  ;;  %s1101_s18 = int_to_ptr.vmem [resolvable:$false] %s1100_s18 }
  0x36   : > { %p1098_p8 = pnand %p1096_p7, %p1084_p2  ;;  %s1102_s3 = scalar_lea.vmem %s1101_s18, 128 }
  0x37   : > { %p1103_p6 = scmp.lt.s32.totalorder %s257_s7, %s1101_s18  ;;  %p1104_p10 = scmp.lt.s32.totalorder %s1102_s3, %s1095_s14 }
  0x38   : > { %p1099_p9 = pneg %p1098_p8 }
  0x39   : > { %p1105_p12 = por %p1104_p10, %p1103_p6 }
  0x3b   : > { %p1106_p13 = pnand %p1105_p12, %p1099_p9 }
  0x3d   : > { %1109 = shalt.err (!%p1106_p13)
}
  0x3e   : > { %962 = dma.hbm_to_vmem [thread:$0]  (!%p1377_p0), %s254_s23, 64, %s257_s7, %s245_s26  }
  0x3f   : > { %265 = sbr.rel (%p1334_p11) target bundleno = 430 (0x1ae), region = 40  ;;  %s267_s6 = sand.u32 (!%p1334_p11), 1, %s1202_s27  }
  0x40   : > { %s909_s12 = sshll.u32 (!%p1334_p11), %s267_s6, 2  ;;  %s268_s19 = scalar_lea.sflag (!%p1334_p11), [#allocation7], %s267_s6 }
  0x41   : > { %s271_s20 = scalar_lea.vmem (!%p1334_p11), [#allocation6], %s909_s12 }
  0x44   : > { %1173 = dma.done.wait (%p1318_p4), %s268_s19, 64  }
  0x45   : > { %1175 = vsyncadd (%p1318_p4), %s268_s19, 4294967232 }
  0x46   : > { %1177 = dma.done.wait (%p1310_p1), [#allocation10], 16  }
  0x47   : > { %1179 = vsyncadd (%p1310_p1), [#allocation10], 4294967280  ;;  %p312_p11 = scmp.lt.s32.totalorder %s1210_s29, 1  ;;  %v1222_v0 = vmov 0.0   ;;  %vm1223_vm0 = vmmov 0   ;;  %v1224_v1 = vmov 0   ;;  %v376_v21 = vlaneseq }
  0x48   : > { %941 = vmatprep.subr.bf16.mxu0 %v1222_v0  ;;  %943 = vmatprep.mubr.msk.bf16.mxu0 %vm1223_vm0, %v1222_v0  ;;  %vm327_vm1 = vcmask 261120   ;;  %v375_v3 = vld [vmem:[%s1647_s4] sm:$0xff]  ;;  %v326_v5 = vld [vmem:[%s271_s20] sm:$0xf]  ;;  %vm415_vm2 = vcmask 64512   ;;  %s916_s26 = sshll.u32 %s1210_s29, 3 }
  0x49   : > { %s313_s23 = scalar_select %p312_p11, %s1210_s29, 1  ;;  %1047 = vset.pattern.permute.xlu0 %v1224_v1  ;;  %v444_v22 = vand.u32 127, %v376_v21  ;;  %v448_v23 = vstv %s916_s26  ;;  %v913_v30 = vld [vmem:[#allocation9] ss:$0 sm:$0xff]  ;;  %v1413_v32 = vshrl.u32 %v376_v21, 7 }
  0x4a   : > { %379 = vperm.xlu0 %1047, %v375_v3   ;;  %s453_s14 = sld [smem:[#allocation5]]  ;;  %v1424_v58 = vld [vmem:[%s1648_s5] sm:$0x1]  ;;  %v1429_v59 = vld [vmem:[%s1648_s5 + $0x1] sm:$0x1]  ;;  %s310_s22 = sand.u32 1, %s1190_s24  }
  0x4b   : > { %s911_s10 = sshll.u32 %s313_s23, 2  ;;  %v449_v25 = vadd.s32 %v448_v23, %v444_v22  ;;  %v1419_v57 = vsub.s32 0, %v1413_v32  ;;  %v1434_v60 = vld [vmem:[%s1648_s5 + $0x2] sm:$0x1]  ;;  %v1443_v1 = vld [vmem:[%s1648_s5 + $0x3] sm:$0x1] }
  0x4c   : > { %s318_s7 = scalar_lea.vmem %s1644_s1, %s911_s10  ;;  %v1450_v3 = vld [vmem:[%s1648_s5 + $0x4] sm:$0x1]  ;;  %s936_s18 = sshll.u32 %s1210_s29, 4 }
  0x4d   : > { %v325_v2 = vld [vmem:[%s318_s7] sm:$0xf]  ;;  %v450_v28 = vmul.u32 8, %v449_v25  ;;  %v573_v62 = vrot.slane %v1424_v58, %v1419_v57  ;;  %v596_v63 = vrot.slane %v1429_v59, %v1419_v57  ;;  %s311_s3 = scalar_lea.vmem [#allocation11], %s310_s22  ;;  %s1682_s20 = sld [smem:[#allocation18_spill]] }
  0x4e   : > { %v332_v4 = vsel %vm327_vm1, %v325_v2, 0  ;;  %v621_v2 = vrot.slane %v1434_v60, %v1419_v57  ;;  %s783_s6 = sshll.u32 %s311_s3, 4  ;;  %s770_s10 = scalar_lea.sflag [#allocation8], %s310_s22  ;;  %s784_s6 = int_to_ptr.vmem [resolvable:$true] %s783_s6 }
  0x4f   : > { %942 = vmatpush3.bf16.xpose.msra.mxu0 %v332_v4  ;;  %v451_v35 = vadd.s32 %v450_v28, %v1413_v32  ;;  %v1455_v4 = vld [vmem:[%s1648_s5 + $0x5] sm:$0x1]  ;;  %vm1458_vm9 = vcmp.eq.s32.totalorder %v1413_v32, %v573_v62  ;;  %vm1465_vm10 = vcmp.eq.s32.totalorder %v1413_v32, %v596_v63  ;;  %s1110_s13 = scalar_lea.vmem %s784_s6, 16  ;;  %p1683_p4 = scmp.ne.s32.totalorder %s1659_s11, 0 }
  0x50   : > { %v454_v40 = vstv %s453_s14  ;;  %vm1472_vm11 = vcmp.eq.s32.totalorder %v1413_v32, %v621_v2  ;;  %p1111_p1 = scmp.ne.s32.totalorder %s784_s6, %s1110_s13  ;;  %s1225_s21 = smov [#allocation11]  }
  0x51   : > { %v452_v39 = vmul.u32 2654435769, %v451_v35  ;;  %s1114_s29 = sshll.u32 %s1225_s21, 4  ;;  %s1115_s29 = int_to_ptr.vmem [resolvable:$false] %s1114_s29 }
  0x52   : > { %p1112_p3 = pnand %p1111_p1, %p1683_p4  ;;  %s1116_s7 = scalar_lea.vmem %s1115_s29, 32 }
  0x53   : > { %v455_v43 = vadd.s32 %v454_v40, %v452_v39  ;;  %s781_s23 = scalar_lea.hbm %s1682_s20, %s936_s18  ;;  %p1117_p0 = scmp.lt.s32.totalorder %s784_s6, %s1115_s29 }
  0x54   : > { %p1113_p5 = pneg %p1112_p3  ;;  %p1118_p2 = scmp.lt.s32.totalorder %s1116_s7, %s1110_s13 }
  0x55   : > { %v917_v47 = vshrl.u32 %v455_v43, 16 }
  0x56   : > { %944 = vmatmul.mubr.msk.bf16.vlgmr.msra.gmra.mxu0 %vm327_vm1, %v326_v5  ;;  %p1119_p7 = por %p1118_p2, %p1117_p0 }
  0x57   : > { %v458_v50 = vxor.u32 %v917_v47, %v455_v43 }
  0x58   : > { %p1120_p8 = pnand %p1119_p7, %p1113_p5 }
  0x59   : > { %v459_v53 = vmul.u32 2246822507, %v458_v50 }
  0x5b   : > { %v918_v56 = vshrl.u32 %v459_v53, 13 }
  0x5d   : > { %v462_v61 = vxor.u32 %v918_v56, %v459_v53 }
  0xc5   : > { %v380_v29 = vpop.permute.xlu0 %379 }
  0xc6   : > { %vm385_vm5 = vcmp.ne.s32.totalorder %v380_v29, %v913_v30 }
  0xc7   : > { %v388_v37 = vsel %vm385_vm5, 1.0, %v1222_v0 }
 0x116   : > { %v368_v6 = vpop.f32.mrf.mxu0 }
 0x117   : > { %v389_v7 = vmul.f32 2.0, %v368_v6  ;;  %442 = vst.msk [vmem:[#allocation3] sm:$0xff] %vm415_vm2, %v368_v6  ;;  %v463_v6 = vmul.u32 3266489909, %v462_v61 }
 0x118   : > { %v945_v8 = vpop.f32.mrf.mxu0 }
 0x119   : > { %v390_v9 = vsub.f32 2.0, %v389_v7  ;;  %v646_v8 = vrot.slane %v1443_v1, %v1419_v57 }
 0x11a   : > { %v371_v10 = vpop.f32.mrf.mxu0 }
 0x11b   : > { %1048 = vrsqrt.f32 %v390_v9  ;;  %vm393_vm3 = vcmp.eq.f32.partialorder %v390_v9, inf  ;;  %v396_v14 = vand.u32 2147483648, %v390_v9  ;;  %vm395_vm4 = vcmp.eq.f32.partialorder %v390_v9, 0.0 }
 0x11c   : > { %v946_v11 = vpop.f32.mrf.mxu0  ;;  %v671_v10 = vrot.slane %v1450_v3, %v1419_v57  ;;  %vm1493_vm12 = vcmp.eq.s32.totalorder %v1413_v32, %v646_v8 }
 0x11e   : > { %v568_v5 = vld [vmem:[#allocation3] sm:$0xff]  ;;  %vm1501_vm14 = vcmp.eq.s32.totalorder %v1413_v32, %v671_v10 }
 0x11f   : > { %v648_v28 = vsel %vm1493_vm12, %v568_v5, 0.0 }
 0x120   : > { %v649_v39 = vsel %vm415_vm2, %v648_v28, 0.0 }
 0x128   : > { %v1049_v12 = vpop.eup %1048 }
 0x129   : > { %v392_v13 = vmul.f32 %v1049_v12, %v390_v9  ;;  %v696_v12 = vrot.slane %v1455_v4, %v1419_v57 }
 0x12b   : > { %v394_v15 = vsel %vm393_vm3, %v390_v9, %v392_v13  ;;  %v1481_v13 = vld [vmem:[%s1648_s5 + $0x6] sm:$0x1]  ;;  %vm1509_vm15 = vcmp.eq.s32.totalorder %v1413_v32, %v696_v12  ;;  %vm583_vm3 = vcmp.ge.s32.totalorder %v1424_v58, 0 }
 0x12c   : > { %v397_v16 = vsel %vm395_vm4, %v396_v14, %v394_v15  ;;  %v575_v14 = vsel %vm1458_vm9, %v568_v5, 0.0  ;;  %v1488_v15 = vld [vmem:[%s1648_s5 + $0x7] sm:$0x1]  ;;  %v721_v22 = vrot.slane %v1481_v13, %v1419_v57  ;;  %vm631_vm4 = vcmp.ge.s32.totalorder %v1434_v60, 0 }
 0x12d   : > { %v1407_v17 = vmax.f32 %v397_v16, 0.5  ;;  %v919_v16 = vshrl.u32 %v463_v6, 16 }
 0x12e   : > { %vm1525_vm0 = vcmp.eq.s32.totalorder %v1413_v32, %v721_v22 }
 0x12f   : > { %v402_v18 = vmul.f32 %v1407_v17, %v1407_v17  ;;  %1050 = vlog2.f32 %v1407_v17  ;;  %vm427_vm13 = vcmp.lt.f32.partialorder %v1407_v17, 1.7  ;;  %v746_v17 = vrot.slane %v1488_v15, %v1419_v57 }
 0x130   : > { %v466_v29 = vxor.u32 %v919_v16, %v463_v6  ;;  %v914_v30 = vsel %vm427_vm13, 1.0, %v1222_v0  ;;  %v723_v47 = vsel %vm1525_vm0, %v568_v5, 0.0  ;;  %vm656_vm13 = vcmp.ge.s32.totalorder %v1443_v1, 0 }
 0x131   : > { %v403_v19 = vmul.f32 0.25, %v402_v18  ;;  %v598_v18 = vsel %vm1465_vm10, %v568_v5, 0.0  ;;  %vm1531_vm1 = vcmp.eq.s32.totalorder %v1413_v32, %v746_v17  ;;  %vm731_vm0 = vcmp.ge.s32.totalorder %v1481_v13, 0 }
 0x132   : > { %v748_v32 = vsel %vm1531_vm1, %v568_v5, 0.0  ;;  %vm756_vm1 = vcmp.ge.s32.totalorder %v1488_v15, 0 }
 0x133   : > { %v404_v20 = vsub.f32 1.0, %v403_v19  ;;  %v749_v62 = vsel %vm415_vm2, %v748_v32, 0.0 }
 0x134   : > { %v750_v16 = vrot.slane %v749_v62, 4 }
 0x135   : > { %1052 = vlog2.f32 %v404_v20  ;;  %v623_v20 = vsel %vm1472_vm11, %v568_v5, 0.0 }
 0x13c   : > { %v1051_v24 = vpop.eup %1050 }
 0x13d   : > { %v400_v26 = vmul.f32 0.6931472, %v1051_v24  ;;  %v576_v24 = vsel %vm415_vm2, %v575_v14, 0.0 }
 0x13e   : > { %v577_v35 = vrot.slane %v576_v24, 4 }
 0x13f   : > { %v401_v33 = vmul.f32 -510.0, %v400_v26 }
 0x142   : > { %v1053_v27 = vpop.eup %1052 }
 0x143   : > { %v406_v31 = vmul.f32 0.6931472, %v1053_v27  ;;  %v599_v27 = vsel %vm415_vm2, %v598_v18, 0.0 }
 0x145   : > { %v407_v34 = vmul.f32 254.5, %v406_v31  ;;  %v624_v31 = vsel %vm415_vm2, %v623_v20, 0.0 }
 0x147   : > { %v408_v36 = vsub.f32 %v401_v33, %v407_v34  ;;  %v673_v33 = vsel %vm1501_vm14, %v568_v5, 0.0  ;;  %vm681_vm14 = vcmp.ge.s32.totalorder %v1450_v3, 0 }
 0x148   : > { %v674_v43 = vsel %vm415_vm2, %v673_v33, 0.0  ;;  %v751_v33 = vadd.f32 %v750_v16, %v749_v62 }
 0x149   : > { %v409_v38 = vand.u32 2147483647, %v408_v36  ;;  %vm411_vm7 = vcmp.ne.f32.partialorder %v408_v36, %v408_v36  ;;  %v413_v41 = vmul.f32 %v408_v36, %v388_v37  ;;  %v698_v36 = vsel %vm1509_vm15, %v568_v5, 0.0 }
 0x14a   : > { %vm706_vm15 = vcmp.ge.s32.totalorder %v1455_v4, 0 }
 0x14b   : > { %vm410_vm6 = vcmp.eq.f32.partialorder %v409_v38, inf  ;;  %v600_v38 = vrot.slane %v599_v27, 4 }
 0x14c   : > { %vm412_vm8 = vmor %vm410_vm6, %vm411_vm7 }
 0x14d   : > { %v414_v42 = vsel %vm412_vm8, 0.0, %v413_v41 }
 0x14e   : > { %v416_v44 = vsel %vm415_vm2, %v414_v42, -inf }
 0x14f   : > { %v417_v45 = vrot.slane %v416_v44, 4 }
 0x151   : > { %v418_v46 = vmax.f32 %v416_v44, %v417_v45  ;;  %v467_v44 = vand.u32 8388607, %v466_v29 }
 0x153   : > { %v419_v48 = vrot.slane %v418_v46, 2  ;;  %v468_v56 = vcvt.s32.f32 %v467_v44 }
 0x155   : > { %v420_v49 = vmax.f32 %v418_v46, %v419_v48  ;;  %v699_v46 = vsel %vm415_vm2, %v698_v36, 0.0  ;;  %v578_v48 = vadd.f32 %v577_v35, %v576_v24  ;;  %v469_v18 = vmul.f32 1.1920929e-07, %v468_v56 }
 0x157   : > { %v421_v51 = vrot.slane %v420_v49, 1  ;;  %v579_v63 = vrot.slane %v578_v48, 2 }
 0x159   : > { %v422_v52 = vmax.f32 %v420_v49, %v421_v51  ;;  %v650_v49 = vrot.slane %v649_v39, 4  ;;  %v601_v51 = vadd.f32 %v600_v38, %v599_v27  ;;  %v1546_v22 = vadd.f32 %v579_v63, %v578_v48  ;;  %v920_v38 = vld [vmem:[#allocation3] ss:$0 sm:$0xff]  ;;  %v925_v63 = vld [vmem:[#allocation3 + $0x5] ss:$0 sm:$0xff] }
 0x15b   : > { %v423_v54 = vsub.f32 %v414_v42, %v422_v52  ;;  %v625_v42 = vrot.slane %v624_v31, 4  ;;  %v675_v52 = vrot.slane %v674_v43, 4  ;;  %v651_v2 = vadd.f32 %v650_v49, %v649_v39 }
 0x15c   : > { %v602_v9 = vrot.slane %v601_v51, 2 }
 0x15d   : > { %v424_v55 = vmul.f32 1.442695, %v423_v54  ;;  %v626_v53 = vadd.f32 %v625_v42, %v624_v31  ;;  %v700_v54 = vrot.slane %v699_v46, 4  ;;  %v676_v5 = vadd.f32 %v675_v52, %v674_v43  ;;  %v921_v43 = vld [vmem:[#allocation3 + $0x1] ss:$0 sm:$0xff] }
 0x15e   : > { %v652_v24 = vrot.slane %v651_v2, 2 }
 0x15f   : > { %1054 = vpow2.f32 %v424_v55  ;;  %v724_v55 = vsel %vm415_vm2, %v723_v47, 0.0  ;;  %v627_v12 = vrot.slane %v626_v53, 2  ;;  %v701_v14 = vadd.f32 %v700_v54, %v699_v46  ;;  %v922_v47 = vld [vmem:[#allocation3 + $0x2] ss:$0 sm:$0xff] }
 0x160   : > { %v725_v10 = vrot.slane %v724_v55, 4  ;;  %v677_v27 = vrot.slane %v676_v5, 2  ;;  %v653_v42 = vadd.f32 %v652_v24, %v651_v2  ;;  %v752_v54 = vrot.slane %v751_v33, 2 }
 0x161   : > { %v702_v31 = vrot.slane %v701_v14, 2 }
 0x162   : > { %v726_v28 = vadd.f32 %v725_v10, %v724_v55  ;;  %v924_v55 = vld [vmem:[#allocation3 + $0x4] ss:$0 sm:$0xff] }
 0x164   : > { %v727_v46 = vrot.slane %v726_v28, 2 }
 0x16c   : > { %v1055_v23 = vpop.eup %1054 }
 0x16d   : > { %v426_v26 = vmul.f32 %v1055_v23, %v388_v37  ;;  %v1551_v23 = vsel %vm583_vm3, 1.0, %v1222_v0  ;;  %vm767_vm3 = vcmask 57344  }
 0x16f   : > { %v430_v34 = vmul.f32 %v914_v30, %v426_v26  ;;  %v1555_v26 = vadd.f32 %v602_v9, %v601_v51  ;;  %v628_v30 = vadd.f32 %v627_v12, %v626_v53  ;;  %v923_v51 = vld [vmem:[#allocation3 + $0x3] ss:$0 sm:$0xff]  ;;  %v926_v9 = vld [vmem:[#allocation3 + $0x6] ss:$0 sm:$0xff] }
 0x171   : > { %v431_v41 = vsel %vm415_vm2, %v430_v34, 0.0  ;;  %441 = vst.msk [vmem:[#allocation2] sm:$0xff] %vm415_vm2, %v430_v34  ;;  %vm606_vm2 = vcmp.ge.s32.totalorder %v1429_v59, 0 }
 0x172   : > { %v432_v45 = vrot.slane %v431_v41, 4 }
 0x174   : > { %v433_v50 = vadd.f32 %v432_v45, %v431_v41  ;;  %v581_v41 = vrot.slane %v1546_v22, 1  ;;  %v678_v45 = vadd.f32 %v677_v27, %v676_v5 }
 0x176   : > { %v434_v61 = vrot.slane %v433_v50, 2 }
 0x178   : > { %v435_v6 = vadd.f32 %v434_v61, %v433_v50  ;;  %v477_v7 = vld [vmem:[#allocation2] sm:$0x1]  ;;  %v490_v8 = vld [vmem:[#allocation2 + $0x1] sm:$0x1]  ;;  %v503_v20 = vld [vmem:[#allocation2 + $0x2] sm:$0x1]  ;;  %v703_v50 = vadd.f32 %v702_v31, %v701_v14 }
 0x179   : > { %v492_v11 = vadd.f32 %v490_v8, %v477_v7  ;;  %v516_v17 = vld [vmem:[#allocation2 + $0x3] sm:$0x1]  ;;  %v483_v34 = vrot.slane %v477_v7, %v1419_v57  ;;  %v529_v37 = vld [vmem:[#allocation2 + $0x4] sm:$0x1]  ;;  %v542_v44 = vld [vmem:[#allocation2 + $0x5] sm:$0x1]  ;;  %v728_v8 = vadd.f32 %v727_v46, %v726_v28 }
 0x17a   : > { %v436_v19 = vrot.slane %v435_v6, 1  ;;  %v555_v53 = vld [vmem:[#allocation2 + $0x6] sm:$0x1]  ;;  %v629_v7 = vrot.slane %v628_v30, 1  ;;  %v679_v14 = vrot.slane %v678_v45, 1  ;;  %v704_v16 = vrot.slane %v703_v50, 1 }
 0x17b   : > { %v505_v21 = vadd.f32 %v503_v20, %v492_v11  ;;  %v496_v35 = vrot.slane %v492_v11, %v1419_v57  ;;  %v654_v11 = vrot.slane %v653_v42, 1  ;;  %v929_v20 = vsel %vm606_vm2, 1.0, %v1222_v0 }
 0x17c   : > { %v1553_v25 = vadd.f32 %v436_v19, %v435_v6  ;;  %v604_v6 = vrot.slane %v1555_v26, 1  ;;  %v927_v19 = vld [vmem:[#allocation3 + $0x7] ss:$0 sm:$0xff]  ;;  %v705_v59 = vadd.f32 %v704_v16, %v703_v50 }
 0x17d   : > { %v518_v29 = vadd.f32 %v516_v17, %v505_v21  ;;  %v509_v36 = vrot.slane %v505_v21, %v1419_v57  ;;  %v930_v21 = vsel %vm631_vm4, 1.0, %v1222_v0  ;;  %v729_v17 = vrot.slane %v728_v8, 1 }
 0x17e   : > { %v470_v58 = vmul.f32 %v469_v18, %v1553_v25  ;;  %v753_v18 = vadd.f32 %v752_v54, %v751_v33  ;;  %vm438_vm11 = vcmp.gt.f32.partialorder %v1553_v25, 0.0  ;;  %v605_v28 = vadd.f32 %v604_v6, %v1555_v26 }
 0x17f   : > { %v522_v39 = vrot.slane %v518_v29, %v1419_v57  ;;  %v531_v40 = vadd.f32 %v529_v37, %v518_v29  ;;  %v630_v29 = vadd.f32 %v629_v7, %v628_v30  ;;  %v655_v25 = vadd.f32 %v654_v11, %v653_v42 }
 0x180   : > { %vm484_vm5 = vcmp.le.f32.partialorder %v483_v34, %v470_v58  ;;  %vm497_vm6 = vcmp.le.f32.partialorder %v496_v35, %v470_v58  ;;  %vm510_vm7 = vcmp.le.f32.partialorder %v509_v36, %v470_v58  ;;  %v915_v31 = vsel %vm438_vm11, 1.0, %v1222_v0 }
 0x181   : > { %v489_v48 = vsel %vm484_vm5, %v921_v43, %v920_v38  ;;  %v535_v49 = vrot.slane %v531_v40, %v1419_v57  ;;  %v544_v32 = vadd.f32 %v542_v44, %v531_v40  ;;  %vm523_vm8 = vcmp.le.f32.partialorder %v522_v39, %v470_v58 }
 0x182   : > { %v502_v52 = vsel %vm497_vm6, %v922_v47, %v489_v48  ;;  %v680_v33 = vadd.f32 %v679_v14, %v678_v45  ;;  %v730_v38 = vadd.f32 %v729_v17, %v728_v8  ;;  %v586_v30 = vmul.f32 %v1551_v23, %v915_v31 }
 0x183   : > { %v515_v56 = vsel %vm510_vm7, %v923_v51, %v502_v52  ;;  %vm536_vm9 = vcmp.le.f32.partialorder %v535_v49, %v470_v58  ;;  %v548_v61 = vrot.slane %v544_v32, %v1419_v57  ;;  %v557_v62 = vadd.f32 %v555_v53, %v544_v32 }
 0x184   : > { %v528_v2 = vsel %vm523_vm8, %v924_v55, %v515_v56  ;;  %v609_v42 = vmul.f32 %v929_v20, %v915_v31  ;;  %v931_v43 = vsel %vm656_vm13, 1.0, %v1222_v0  ;;  %v634_v49 = vmul.f32 %v930_v21, %v915_v31 }
 0x185   : > { %v541_v5 = vsel %vm536_vm9, %v925_v63, %v528_v2  ;;  %vm549_vm10 = vcmp.le.f32.partialorder %v548_v61, %v470_v58  ;;  %v561_v10 = vrot.slane %v557_v62, %v1419_v57  ;;  %v582_v57 = vadd.f32 %v581_v41, %v1546_v22 }
 0x186   : > { %v554_v12 = vsel %vm549_vm10, %v926_v9, %v541_v5  ;;  %v932_v32 = vsel %vm681_vm14, 1.0, %v1222_v0  ;;  %v659_v1 = vmul.f32 %v931_v43, %v915_v31  ;;  %v933_v63 = vsel %vm706_vm15, 1.0, %v1222_v0 }
 0x187   : > { %vm562_vm12 = vcmp.le.f32.partialorder %v561_v10, %v470_v58  ;;  %v754_v58 = vrot.slane %v753_v18, 1  ;;  %v684_v62 = vmul.f32 %v932_v32, %v915_v31  ;;  %v934_v7 = vsel %vm731_vm0, 1.0, %v1222_v0 }
 0x188   : > { %v567_v24 = vsel %vm562_vm12, %v927_v19, %v554_v12  ;;  %v709_v13 = vmul.f32 %v933_v63, %v915_v31  ;;  %v935_v10 = vsel %vm756_vm1, 1.0, %v1222_v0  ;;  %v734_v14 = vmul.f32 %v934_v7, %v915_v31 }
 0x189   : > { %v587_v27 = vadd.f32 0.2, %v567_v24  ;;  %v755_v44 = vadd.f32 %v754_v58, %v753_v18  ;;  %v759_v19 = vmul.f32 %v935_v10, %v915_v31 }
 0x18b   : > { %v588_v34 = vsub.f32 %v587_v27, %v582_v57  ;;  %v610_v35 = vsub.f32 %v587_v27, %v605_v28  ;;  %v635_v60 = vsub.f32 %v587_v27, %v630_v29  ;;  %v660_v36 = vsub.f32 %v587_v27, %v655_v25 }
 0x18c   : > { %v685_v22 = vsub.f32 %v587_v27, %v680_v33  ;;  %v710_v37 = vsub.f32 %v587_v27, %v705_v59  ;;  %v735_v48 = vsub.f32 %v587_v27, %v730_v38  ;;  %v760_v50 = vsub.f32 %v587_v27, %v755_v44 }
 0x18d   : > { %v589_v39 = vmax.f32 %v588_v34, 0.0  ;;  %v611_v40 = vmax.f32 %v610_v35, 0.0  ;;  %v636_v41 = vmax.f32 %v635_v60, 0.0  ;;  %v661_v26 = vmax.f32 %v660_v36, 0.0 }
 0x18e   : > { %v686_v47 = vmax.f32 %v685_v22, 0.0  ;;  %v711_v53 = vmax.f32 %v710_v37, 0.0  ;;  %v736_v61 = vmax.f32 %v735_v48, 0.0  ;;  %v761_v6 = vmax.f32 %v760_v50, 0.0 }
 0x18f   : > { %v613_v45 = vrot.slane %v611_v40, 1  ;;  %v638_v46 = vrot.slane %v636_v41, 2  ;;  %v590_v51 = vmul.f32 %v589_v39, %v586_v30  ;;  %v663_v52 = vrot.slane %v661_v26, 3 }
 0x190   : > { %v688_v56 = vrot.slane %v686_v47, 4  ;;  %v713_v2 = vrot.slane %v711_v53, 5  ;;  %v738_v5 = vrot.slane %v736_v61, 6  ;;  %v763_v16 = vrot.slane %v761_v6, 7 }
 0x191   : > { %v615_v23 = vmul.f32 %v613_v45, %v609_v42  ;;  %v640_v55 = vmul.f32 %v638_v46, %v634_v49  ;;  %v665_v4 = vmul.f32 %v663_v52, %v659_v1 }
 0x192   : > { %v690_v9 = vmul.f32 %v688_v56, %v684_v62  ;;  %v715_v12 = vmul.f32 %v713_v2, %v709_v13  ;;  %v740_v15 = vmul.f32 %v738_v5, %v734_v14  ;;  %v765_v21 = vmul.f32 %v763_v16, %v759_v19 }
 0x193   : > { %v616_v54 = vadd.f32 %v615_v23, %v590_v51 }
 0x195   : > { %v641_v3 = vadd.f32 %v640_v55, %v616_v54 }
 0x197   : > { %v666_v8 = vadd.f32 %v665_v4, %v641_v3 }
 0x199   : > { %v691_v11 = vadd.f32 %v690_v9, %v666_v8 }
 0x19b   : > { %v716_v18 = vadd.f32 %v715_v12, %v691_v11 }
 0x19d   : > { %v741_v20 = vadd.f32 %v740_v15, %v716_v18 }
 0x19f   : > { %v766_v24 = vadd.f32 %v765_v21, %v741_v20 }
 0x1a1   : > { %768 = vst.msk [vmem:[%s311_s3] sm:$0x1] %vm767_vm3, %v766_v24 }
 0x1a2   : > { %1123 = shalt.err (!%p1120_p8)
}
 0x1a3   : > { %s1124_s9 = scalar_lea.hbm %s781_s23, 16  ;;  %s1128_s14 = scalar_lea.hbm %s1682_s20, 32 }
 0x1a4   : > { %p1125_p9 = scmp.ne.s32.totalorder %s781_s23, %s1124_s9  ;;  %p1129_p12 = scmp.lt.s32.totalorder %s781_s23, %s1682_s20 }
 0x1a5   : > { %p1130_p13 = scmp.lt.s32.totalorder %s1128_s14, %s1124_s9 }
 0x1a6   : > { %p1126_p6 = pnand %p1125_p9, %p1683_p4 }
 0x1a7   : > { %p1131_p11 = por %p1130_p13, %p1129_p12 }
 0x1a8   : > { %p1127_p10 = pneg %p1126_p6 }
 0x1aa   : > { %p1132_p1 = pnand %p1131_p11, %p1127_p10 }
 0x1ac   : > { %1135 = shalt.err (!%p1132_p1)
}
 0x1ad   : > { %953 = dma.vmem_to_hbm [thread:$0]  (%p1683_p4), %s784_s6, 16, %s781_s23, %s770_s10  }
 0x1ae PF: > { %s1684_s3 = sld [smem:[#allocation15_spill]]  ;;  %p1687_p5 = scmp.ge.s32.totalorder %s1218_s30, 2 }
 0x1af   : > { %s1685_s12 = sld [smem:[#allocation16_spill]] }
 0x1b4   : > { %s795_s19 = sand.u32 1, %s1684_s3  }
 0x1b5   : > { %p1686_p3 = scmp.ne.s32.totalorder %s1685_s12, 0  ;;  %s796_s13 = scalar_lea.sflag [#allocation8], %s795_s19 }
 0x1b7   : > { %p964_p0 = pnand %p1687_p5, %p1686_p3 }
 0x1b9   : > { %p965_p2 = pneg %p964_p0 }
 0x1bb   : > { %1181 = dma.done.wait (%p965_p2), %s796_s13, 16  }
 0x1bc   : > { %1183 = vsyncadd (%p965_p2), %s796_s13, 4294967280  ;;  %s24_s30 = sadd.s32 1, %s1218_s30   ;;  %s1688_s23 = smov %s1190_s24 }
 0x1bd   : > { %p21_p7 = scmp.ge.s32.totalorder %s24_s30, 4   ;;  %s1689_s24 = smov %s1194_s25 }
 0x1be   : > { %s1690_s25 = smov %s1371_s15  ;;  %s1691_s26 = smov %s1202_s27 }
 0x1bf   : > { %s1692_s27 = smov %s1206_s28  ;;  %s1693_s28 = smov %s1366_s16 }
 0x1c0   : > { %s1694_s29 = smov %s1214_s0  ;;  %s1695_s0 = smov %s1697_s17 }
 0x1c1   :  { %23 = sbr.rel (!%p21_p7) target bundleno = 13 (0xd), region = 96 }
 0x1c6   :  { %800 = vsyncpa [#allocation7], 1 }
 0x1c7   :  { %802 = vsyncpa [#allocation7 + $0x1], 1 }
 0x1c8   :  { %803 = vsyncpa [#allocation10], 1 }
 0x1c9   :  { %804 = vsyncpa [#allocation8], 1 }
 0x1ca   :  { %806 = vsyncpa [#allocation8 + $0x1], 1 }

</bundles_post_ra>
